<compile_context>
chip_gen: v7x
topology: tpu7x:2x2x1
jax: 0.10.0
libtpu: 0.0.40
codegen_flags: <defaults>
</compile_context>

<pallas_src>
import functools

import jax
import jax.numpy as jnp
from jax.experimental import pallas as pl
from jax.experimental.pallas import tpu as pltpu


def _mha_head_kernel(x_ref, wqkv_ref, wo_ref, bo_ref, o_ref, acc_ref, *, head_dim):
    # x_ref:    (T, d_in)          current batch element (batch dim squeezed)
    # wqkv_ref: (d_in, 3*head_dim) fused per-head Q|K|V projection weights
    # wo_ref:   (head_dim, d_out)  output-projection rows for this head
    # bo_ref:   (1, d_out)         output-projection bias
    # o_ref:    (T, d_out)         output for this batch element
    # acc_ref:  (T, d_out) f32     output-projection accumulator (across heads)
    h = pl.program_id(1)
    T = x_ref.shape[0]

    @pl.when(h == 0)
    def _():
        # Initialize the accumulator with the output-projection bias.
        acc_ref[...] = jnp.broadcast_to(
            bo_ref[...].astype(jnp.float32), acc_ref.shape)

    # Fused per-head QKV projection (bf16 operands, f32 accumulation).
    x = x_ref[...].astype(jnp.bfloat16)
    wqkv = wqkv_ref[...].astype(jnp.bfloat16)
    qkv = jnp.dot(x, wqkv, preferred_element_type=jnp.float32)  # (T, 3*head_dim)

    scale = 1.0 / (head_dim ** 0.5)
    q = qkv[:, 0:head_dim] * scale          # fold softmax scale into q (O(T*hd))
    k = qkv[:, head_dim:2 * head_dim]
    v = qkv[:, 2 * head_dim:]

    # Scores: contract the head dim of q and k without an explicit transpose.
    s = jax.lax.dot_general(
        q.astype(jnp.bfloat16), k.astype(jnp.bfloat16),
        dimension_numbers=(((1,), (1,)), ((), ())),
        preferred_element_type=jnp.float32)                     # (T, T)

    # Additive causal mask: position i attends to j <= i
    # (torch.triu(ones, diagonal=1) masks j > i).
    row = jax.lax.broadcasted_iota(jnp.int32, (T, T), 0)
    col = jax.lax.broadcasted_iota(jnp.int32, (T, T), 1)
    s = s + jnp.where(row >= col, 0.0, -1e30).astype(jnp.float32)

    # Numerically-stable softmax along the last axis (f32 statistics).
    s = s - jnp.max(s, axis=-1, keepdims=True)
    p = jnp.exp(s)
    p = p * pl.reciprocal(jnp.sum(p, axis=-1, keepdims=True), approx=True)

    # TODO(synk): dropout on attention weights is identity here (inference mode).

    ctx = jnp.dot(p.astype(jnp.bfloat16), v.astype(jnp.bfloat16),
                  preferred_element_type=jnp.float32)           # (T, head_dim)

    # Accumulate this head's contribution to the output projection.
    acc_ref[...] += jnp.dot(ctx.astype(jnp.bfloat16),
                            wo_ref[...].astype(jnp.bfloat16),
                            preferred_element_type=jnp.float32)  # (T, d_out)

    @pl.when(h == pl.num_programs(1) - 1)
    def _():
        o_ref[...] = acc_ref[...].astype(o_ref.dtype)


def self_attention_pallas(x, wq, wk, wv, wo, bo, *, num_heads):
    """x: (B, T, d_in); wq/wk/wv: (d_in, d_out); wo: (d_out, d_out); bo: (d_out,)."""
    B, T, d_in = x.shape
    d_out = wq.shape[1]
    assert d_out % num_heads == 0, "d_out must be divisible by num_heads"
    head_dim = d_out // num_heads

    # Pack per-head fused QKV weights: (num_heads, d_in, 3*head_dim) with the
    # layout [Wq_h | Wk_h | Wv_h] along the last axis.
    wq_h = wq.reshape(d_in, num_heads, head_dim)
    wk_h = wk.reshape(d_in, num_heads, head_dim)
    wv_h = wv.reshape(d_in, num_heads, head_dim)
    wqkv = jnp.concatenate([wq_h, wk_h, wv_h], axis=-1)   # (d_in, H, 3*hd)
    wqkv = jnp.transpose(wqkv, (1, 0, 2))                 # (H, d_in, 3*hd)

    bo2 = bo.reshape(1, d_out)

    kernel = functools.partial(_mha_head_kernel, head_dim=head_dim)

    return pl.pallas_call(
        kernel,
        out_shape=jax.ShapeDtypeStruct((B, T, d_out), x.dtype),
        grid_spec=pltpu.PrefetchScalarGridSpec(
            num_scalar_prefetch=0,
            grid=(B, num_heads),
            in_specs=[
                # x: same block for every head -> stays resident in VMEM.
                pl.BlockSpec((None, T, d_in), lambda b, h: (b, 0, 0)),
                # fused per-head QKV weights.
                pl.BlockSpec((None, d_in, 3 * head_dim), lambda b, h: (h, 0, 0)),
                # output-projection rows for head h.
                pl.BlockSpec((head_dim, d_out), lambda b, h: (h, 0)),
                # output-projection bias.
                pl.BlockSpec((1, d_out), lambda b, h: (0, 0)),
            ],
            # Output block revisited across the head axis (accumulator pattern).
            out_specs=pl.BlockSpec((None, T, d_out), lambda b, h: (b, 0, 0)),
            scratch_shapes=[pltpu.VMEM((T, d_out), jnp.float32)],
        ),
        compiler_params=pltpu.CompilerParams(
            dimension_semantics=("parallel", "arbitrary"),
            vmem_limit_bytes=48 * 1024 * 1024),
    )(x, wqkv, wo, bo2)


def self_attention_ref(x, wq, wk, wv, wo, bo, *, num_heads):
    """Pure-JAX reference matching the PyTorch forward (dropout = identity)."""
    B, T, d_in = x.shape
    d_out = wq.shape[1]
    head_dim = d_out // num_heads
    q = x @ wq
    k = x @ wk
    v = x @ wv
    q = q.reshape(B, T, num_heads, head_dim).transpose(0, 2, 1, 3)
    k = k.reshape(B, T, num_heads, head_dim).transpose(0, 2, 1, 3)
    v = v.reshape(B, T, num_heads, head_dim).transpose(0, 2, 1, 3)
    att = jnp.einsum("bhqd,bhkd->bhqk", q, k)
    mask = jnp.triu(jnp.ones((T, T), dtype=bool), k=1)
    att = jnp.where(mask, -jnp.inf, att)
    att = jax.nn.softmax(att / (head_dim ** 0.5), axis=-1)
    ctx = jnp.einsum("bhqk,bhkd->bhqd", att, v).transpose(0, 2, 1, 3).reshape(B, T, d_out)
    return ctx @ wo + bo


if __name__ == "__main__":
    # Module hyperparameters (small, consistent with the forward pass).
    B, T = 2, 8
    D_IN, D_OUT = 32, 32
    NUM_HEADS = 4
    CONTEXT_LENGTH = 8   # num_tokens == context_length here
    DROP_OUT = 0.0       # dropout treated as identity (inference)

    key = jax.random.PRNGKey(0)
    kx, kq, kk, kv, ko, kb = jax.random.split(key, 6)

    x = jax.random.normal(kx, (B, T, D_IN), dtype=jnp.float32)
    # Deterministic parameter init (shapes match nn.Linear(d_in, d_out), stored transposed).
    wq = jax.random.normal(kq, (D_IN, D_OUT), dtype=jnp.float32) * 0.1
    wk = jax.random.normal(kk, (D_IN, D_OUT), dtype=jnp.float32) * 0.1
    wv = jax.random.normal(kv, (D_IN, D_OUT), dtype=jnp.float32) * 0.1
    wo = jax.random.normal(ko, (D_OUT, D_OUT), dtype=jnp.float32) * 0.1
    bo = jax.random.normal(kb, (D_OUT,), dtype=jnp.float32) * 0.1

    out = self_attention_pallas(x, wq, wk, wv, wo, bo, num_heads=NUM_HEADS)
    out = jax.block_until_ready(out)

    ref = self_attention_ref(x, wq, wk, wv, wo, bo, num_heads=NUM_HEADS)
    assert out.shape == (B, T, D_OUT)
    # Tolerance accounts for bf16 matmul operands + approx EUP reciprocal
    # (accumulation and softmax statistics stay in f32).
    assert jnp.allclose(out, ref, atol=2e-2, rtol=2e-2), "mismatch vs reference"

    print("KERNEL_OK")
</pallas_src>

<mosaic_0001>
module attributes {stable_mosaic.version = 11 : i64} {
  func.func @_mha_head_kernel(%arg0: i32, %arg1: i32, %arg2: memref<1x8x32xf32, #tpu.memory_space<vmem>>, %arg3: memref<1x32x24xf32, #tpu.memory_space<vmem>>, %arg4: memref<8x32xf32, #tpu.memory_space<vmem>>, %arg5: memref<1x32xf32, #tpu.memory_space<vmem>>, %arg6: memref<1x8x32xf32, #tpu.memory_space<vmem>>, %arg7: memref<8x32xf32, #tpu.memory_space<vmem>>) attributes {dimension_semantics = [#tpu.dimension_semantics<parallel>, #tpu.dimension_semantics<arbitrary>], iteration_bounds = array<i64: 2, 4>, scalar_prefetch = 0 : i64, scratch_operands = 1 : i64, tpu.core_type = #tpu.core_type<tc>, window_params = [{transform_indices = @transform_0, window_bounds = array<i64: 1, 8, 32>}, {transform_indices = @transform_1, window_bounds = array<i64: 1, 32, 24>}, {transform_indices = @transform_2, window_bounds = array<i64: 8, 32>}, {pipeline_mode = #tpu.pipeline_mode<synchronous>, transform_indices = @transform_3, window_bounds = array<i64: 1, 32>}, {transform_indices = @transform_4, window_bounds = array<i64: 1, 8, 32>}]} {
    %c0_i32 = arith.constant 0 : i32
    %0 = arith.cmpi eq, %arg1, %c0_i32 : i32
    %1 = arith.extui %0 : i1 to i32
    %c0_i32_0 = arith.constant 0 : i32
    %2 = arith.cmpi ne, %1, %c0_i32_0 : i32
    scf.if %2 {
      %c0_21 = arith.constant 0 : index
      %c0_22 = arith.constant 0 : index
      %48 = vector.load %arg5[%c0_21, %c0_22] : memref<1x32xf32, #tpu.memory_space<vmem>>, vector<1x32xf32>
      %49 = vector.shape_cast %48 : vector<1x32xf32> to vector<1x32xf32>
      %50 = vector.broadcast %49 : vector<1x32xf32> to vector<8x32xf32>
      %c0_23 = arith.constant 0 : index
      %c0_24 = arith.constant 0 : index
      %51 = vector.load %arg7[%c0_23, %c0_24] : memref<8x32xf32, #tpu.memory_space<vmem>>, vector<8x32xf32>
      tpu.vector_store %arg7[%c0_23, %c0_24], %50 {strides = array<i32>} : memref<8x32xf32, #tpu.memory_space<vmem>>, vector<8x32xf32>,
    } else {
    }
    %c0 = arith.constant 0 : index
    %c0_1 = arith.constant 0 : index
    %c0_2 = arith.constant 0 : index
    %3 = vector.load %arg2[%c0, %c0_1, %c0_2] : memref<1x8x32xf32, #tpu.memory_space<vmem>>, vector<1x8x32xf32>
    %4 = vector.shape_cast %3 : vector<1x8x32xf32> to vector<8x32xf32>
    %5 = arith.truncf %4 : vector<8x32xf32> to vector<8x32xbf16>
    %c0_3 = arith.constant 0 : index
    %c0_4 = arith.constant 0 : index
    %c0_5 = arith.constant 0 : index
    %6 = vector.load %arg3[%c0_3, %c0_4, %c0_5] : memref<1x32x24xf32, #tpu.memory_space<vmem>>, vector<1x32x24xf32>
    %7 = vector.shape_cast %6 : vector<1x32x24xf32> to vector<32x24xf32>
    %8 = arith.truncf %7 : vector<32x24xf32> to vector<32x24xbf16>
    %cst = arith.constant dense<0.000000e+00> : vector<8x24xf32>
    %9 = tpu.matmul %5, %8, %cst {dimension_numbers = #tpu.dot_dimension_numbers<[1], [0], [0], [1], [0, 0, 1, 1], [], []>} : vector<8x32xbf16>, vector<32x24xbf16>, vector<8x24xf32> -> vector<8x24xf32>
    %10 = vector.extract_strided_slice %9 {offsets = [0, 0], sizes = [8, 8], strides = [1, 1]} : vector<8x24xf32> to vector<8x8xf32>
    %cst_6 = arith.constant 0.353553385 : f32
    %11 = vector.broadcast %cst_6 : f32 to vector<8x8xf32>
    %12 = arith.mulf %10, %11 : vector<8x8xf32>
    %13 = vector.extract_strided_slice %9 {offsets = [0, 8], sizes = [8, 8], strides = [1, 1]} : vector<8x24xf32> to vector<8x8xf32>
    %14 = vector.extract_strided_slice %9 {offsets = [0, 16], sizes = [8, 8], strides = [1, 1]} : vector<8x24xf32> to vector<8x8xf32>
    %15 = arith.truncf %12 : vector<8x8xf32> to vector<8x8xbf16>
    %16 = arith.truncf %13 : vector<8x8xf32> to vector<8x8xbf16>
    %cst_7 = arith.constant dense<0.000000e+00> : vector<8x8xf32>
    %17 = tpu.matmul %15, %16, %cst_7 {dimension_numbers = #tpu.dot_dimension_numbers<[1], [1], [0], [0], [0, 0, 1, 0], [], []>} : vector<8x8xbf16>, vector<8x8xbf16>, vector<8x8xf32> -> vector<8x8xf32>
    %18 = tpu.iota {dimensions = array<i32: 0>} : vector<8x8xi32>
    %19 = tpu.iota {dimensions = array<i32: 1>} : vector<8x8xi32>
    %20 = arith.cmpi sge, %18, %19 : vector<8x8xi32>
    %cst_8 = arith.constant 0.000000e+00 : f32
    %cst_9 = arith.constant -1.000000e+30 : f32
    %21 = vector.broadcast %cst_8 : f32 to vector<8x8xf32>
    %22 = vector.broadcast %cst_9 : f32 to vector<8x8xf32>
    %23 = arith.select %20, %21, %22 : vector<8x8xi1>, vector<8x8xf32>
    %24 = arith.addf %17, %23 : vector<8x8xf32>
    %cst_10 = arith.constant dense<0xFF800000> : vector<8xf32>
    %25 = vector.multi_reduction <maximumf>, %24, %cst_10 [1] : vector<8x8xf32> to vector<8xf32>
    %26 = vector.shape_cast %25 : vector<8xf32> to vector<8x1xf32>
    %27 = vector.broadcast %26 : vector<8x1xf32> to vector<8x8xf32>
    %28 = arith.subf %24, %27 : vector<8x8xf32>
    %29 = math.exp %28 : vector<8x8xf32>
    %cst_11 = arith.constant dense<0.000000e+00> : vector<8xf32>
    %30 = vector.multi_reduction <add>, %29, %cst_11 [1] : vector<8x8xf32> to vector<8xf32>
    %31 = vector.shape_cast %30 : vector<8xf32> to vector<8x1xf32>
    %32 = tpu.reciprocal %31 {approx = true} : vector<8x1xf32> -> vector<8x1xf32>
    %33 = vector.broadcast %32 : vector<8x1xf32> to vector<8x8xf32>
    %34 = arith.mulf %29, %33 : vector<8x8xf32>
    %35 = arith.truncf %34 : vector<8x8xf32> to vector<8x8xbf16>
    %36 = arith.truncf %14 : vector<8x8xf32> to vector<8x8xbf16>
    %cst_12 = arith.constant dense<0.000000e+00> : vector<8x8xf32>
    %37 = tpu.matmul %35, %36, %cst_12 {dimension_numbers = #tpu.dot_dimension_numbers<[1], [0], [0], [1], [0, 0, 1, 1], [], []>} : vector<8x8xbf16>, vector<8x8xbf16>, vector<8x8xf32> -> vector<8x8xf32>
    %c0_13 = arith.constant 0 : index
    %c0_14 = arith.constant 0 : index
    %38 = vector.load %arg7[%c0_13, %c0_14] : memref<8x32xf32, #tpu.memory_space<vmem>>, vector<8x32xf32>
    %39 = arith.truncf %37 : vector<8x8xf32> to vector<8x8xbf16>
    %c0_15 = arith.constant 0 : index
    %c0_16 = arith.constant 0 : index
    %40 = vector.load %arg4[%c0_15, %c0_16] : memref<8x32xf32, #tpu.memory_space<vmem>>, vector<8x32xf32>
    %41 = arith.truncf %40 : vector<8x32xf32> to vector<8x32xbf16>
    %cst_17 = arith.constant dense<0.000000e+00> : vector<8x32xf32>
    %42 = tpu.matmul %39, %41, %cst_17 {dimension_numbers = #tpu.dot_dimension_numbers<[1], [0], [0], [1], [0, 0, 1, 1], [], []>} : vector<8x8xbf16>, vector<8x32xbf16>, vector<8x32xf32> -> vector<8x32xf32>
    %43 = arith.addf %38, %42 : vector<8x32xf32>
    %c0_18 = arith.constant 0 : index
    %c0_19 = arith.constant 0 : index
    %44 = vector.load %arg7[%c0_18, %c0_19] : memref<8x32xf32, #tpu.memory_space<vmem>>, vector<8x32xf32>
    tpu.vector_store %arg7[%c0_18, %c0_19], %43 {strides = array<i32>} : memref<8x32xf32, #tpu.memory_space<vmem>>, vector<8x32xf32>,
    %c3_i32 = arith.constant 3 : i32
    %45 = arith.cmpi eq, %arg1, %c3_i32 : i32
    %46 = arith.extui %45 : i1 to i32
    %c0_i32_20 = arith.constant 0 : i32
    %47 = arith.cmpi ne, %46, %c0_i32_20 : i32
    scf.if %47 {
      %c0_21 = arith.constant 0 : index
      %c0_22 = arith.constant 0 : index
      %48 = vector.load %arg7[%c0_21, %c0_22] : memref<8x32xf32, #tpu.memory_space<vmem>>, vector<8x32xf32>
      %c0_23 = arith.constant 0 : index
      %c0_24 = arith.constant 0 : index
      %c0_25 = arith.constant 0 : index
      %49 = vector.load %arg6[%c0_23, %c0_24, %c0_25] : memref<1x8x32xf32, #tpu.memory_space<vmem>>, vector<1x8x32xf32>
      %50 = vector.shape_cast %49 : vector<1x8x32xf32> to vector<8x32xf32>
      %51 = vector.shape_cast %48 : vector<8x32xf32> to vector<1x8x32xf32>
      tpu.vector_store %arg6[%c0_23, %c0_24, %c0_25], %51 {strides = array<i32>} : memref<1x8x32xf32, #tpu.memory_space<vmem>>, vector<1x8x32xf32>,
    } else {
    }
    return
  }
  func.func @transform_0(%arg0: i32, %arg1: i32) -> (i32, i32, i32) {
    %c0_i32 = arith.constant 0 : i32
    %c0_i32_0 = arith.constant 0 : i32
    %c0_i32_1 = arith.constant 0 : i32
    return %arg0, %c0_i32, %c0_i32_0 : i32, i32, i32
  }
  func.func @transform_1(%arg0: i32, %arg1: i32) -> (i32, i32, i32) {
    %c0_i32 = arith.constant 0 : i32
    %c0_i32_0 = arith.constant 0 : i32
    %c0_i32_1 = arith.constant 0 : i32
    return %arg1, %c0_i32, %c0_i32_0 : i32, i32, i32
  }
  func.func @transform_2(%arg0: i32, %arg1: i32) -> (i32, i32) {
    %c0_i32 = arith.constant 0 : i32
    %c0_i32_0 = arith.constant 0 : i32
    return %arg1, %c0_i32 : i32, i32
  }
  func.func @transform_3(%arg0: i32, %arg1: i32) -> (i32, i32) {
    %c0_i32 = arith.constant 0 : i32
    %c0_i32_0 = arith.constant 0 : i32
    %c0_i32_1 = arith.constant 0 : i32
    return %c0_i32, %c0_i32_0 : i32, i32
  }
  func.func @transform_4(%arg0: i32, %arg1: i32) -> (i32, i32, i32) {
    %c0_i32 = arith.constant 0 : i32
    %c0_i32_0 = arith.constant 0 : i32
    %c0_i32_1 = arith.constant 0 : i32
    return %arg0, %c0_i32, %c0_i32_0 : i32, i32, i32
  }
}

</mosaic_0001>

<bundles_post_ra>
// kernel: tpu_custom_call.1
= control target key start
LH: loop header
LB: loop body
LE: loop exit
PB: predicated region body
PF: predicated region fallthrough
CT: control target
= control target key end

     0   :  { %9 = vsyncpa [#allocation4], 0  ;;  %s1024_s0 = inlined_call_operand.vmem [shape: f32[2,8,32], index: 0, kind: input, shape index: {}]   ;;  %s1025_s1 = inlined_call_operand.vmem [shape: f32[4,32,24], index: 1, kind: input, shape index: {}]   ;;  %s1026_s2 = inlined_call_operand.vmem [shape: f32[32,32], index: 2, kind: input, shape index: {}]   ;;  %s1027_s3 = inlined_call_operand.vmem [shape: f32[1,32], index: 3, kind: input, shape index: {}]   ;;  %s1028_s4 = inlined_call_operand.hbm [shape: f32[2,8,32], index: 4, kind: output, shape index: {}]  }
   0x1   :  { %11 = vsyncpa [#allocation4 + $0x1], 0  ;;  %s858_s15 = smov 0   ;;  %s860_s16 = smov 0  }
   0x2   :  { %s862_s17 = smov 0   ;;  %s864_s18 = smov 0  }
   0x3   :  { %s866_s19 = smov 0   ;;  %s868_s20 = smov 0  }
   0x4   :  { %s870_s21 = smov 0   ;;  %s872_s22 = smov 0  }
   0x5 LB: > { %1033 = sst [smem:[#allocation6_spill]] %s817_s20  ;;  %s594_s23 = sadd.s32 4294967295, %s825_s22   ;;  %s825_s22 = sphi %s872_s22, %s17_s22   ;;  %s821_s21 = sphi %s870_s21, %s1043_s21   ;;  %s817_s20 = sphi %s868_s20, %s1042_s20   ;;  %s813_s19 = sphi %s866_s19, %s1041_s19   ;;  %s809_s18 = sphi %s864_s18, %s1040_s18   ;;  %s805_s17 = sphi %s862_s17, %s1046_s17   ;;  %s801_s16 = sphi %s860_s16, %s1045_s16   ;;  %s797_s15 = sphi %s858_s15, %s1044_s15  }
   0x6   : > { %1034 = sst [smem:[#allocation7_spill]] %s821_s21  ;;  %s595_s24 = sadd.s32 4294967294, %s825_s22  }
   0x7   : > { %s26_s25 = sadd.s32 1, %s817_s20  ;;  %s29_s26 = sadd.s32 1, %s821_s21 }
   0x8   : > { %p27_p0 = scmp.ge.s32.totalorder %s26_s25, 4  ;;  %p145_p1 = scmp.ne.s32.totalorder %s805_s17, %s801_s16 }
   0x9   : > { %p146_p2 = scmp.eq.s32.totalorder %s594_s23, 7  ;;  %p151_p4 = scmp.ne.s32.totalorder %s801_s16, %s797_s15 }
   0xa   : > { %s1048_s25 = smov (%p27_p0, %s26_s25), 0  ;;  %s1050_s26 = smov (!%p27_p0, %s29_s26), %s821_s21 }
   0xb   : > { %1035 = sst [smem:[#allocation8_spill]] %s1048_s25  ;;  %p907_p3 = por %p146_p2, %p145_p1 }
   0xc   : > { %p31_p5 = scmp.ge.s32.totalorder %s1050_s26, 2  ;;  %p152_p6 = scmp.eq.s32.totalorder %s595_s24, 7 }
   0xd   : > { %p598_p7 = scmp.ge.s32.totalorder %s825_s22, 1  ;;  %p195_p8 = scmp.lt.s32.totalorder %s825_s22, 9 }
   0xe   : > { %s1052_s26 = smov (%p31_p5, %s1050_s26), 0  ;;  %p917_p9 = por %p152_p6, %p151_p4 }
   0xf   : > { %1037 = sst [smem:[#allocation9_spill]] %s1052_s26  ;;  %p196_p10 = pnand %p598_p7, %p195_p8 }
  0x10   : > { %s132_s29 = ssub.s32 %s821_s21, %s1052_s26  ;;  %s135_s30 = sadd.s32 1, %s805_s17 }
  0x11   : > { %p133_p11 = scmp.eq.s32.totalorder %s132_s29, 0  ;;  %199 = sbr.rel (%p196_p10) target bundleno = 1372 (0x55c), region = 36 }
  0x12   : > { %s1030_s6 = sand.u32 (!%p196_p10), 1, %s801_s16   ;;  %p229_p12 = scmp.lt.s32.totalorder (!%p196_p10), %s813_s19, 1 }
  0x13   : > { %s925_s5 = scalar_select %p133_p11, %s805_s17, %s135_s30  }
  0x14   : > { %s931_s7 = sshll.u32 (!%p196_p10), %s1030_s6, 3  ;;  %p233_p13 = scmp.lt.s32.totalorder (!%p196_p10), %s809_s18, 3 }
  0x15   : > { %s228_s21 = scalar_lea.vmem (!%p196_p10), [#allocation3], %s931_s7  ;;  %p604_p0 = scmp.ne.s32.totalorder (!%p196_p10), %s809_s18, 0 }
  0x18   : > { %s230_s8 = scalar_select %p229_p12, %s813_s19, 1 }
  0x19   : > { %s234_s9 = scalar_select %p233_p13, %s809_s18, 3 }
  0x1a   : > { %s600_s10 = sshll.u32 %s230_s8, 3  ;;  %246 = sbr.rel (%p604_p0) target bundleno = 33 (0x21), region = 40  ;;  %v605_v0 = vld [vmem:[%s1027_s3] ss:$0 sm:$0xff] (!%p604_p0)  ;;  %vm254_vm0 = vcmask (!%p604_p0), 261120  }
  0x1b   : > { %s232_s13 = scalar_lea.vmem %s1024_s0, %s600_s10  ;;  %s615_s14 = sshll.u32 %s234_s9, 5  ;;  %255 = vst.msk [vmem:[#allocation2] sm:$0xff] (!%p604_p0), %vm254_vm0, %v605_v0 }
  0x1c   : > { %s237_s29 = scalar_lea.vmem %s1025_s1, %s615_s14  ;;  %s603_s30 = sshll.u32 %s234_s9, 3 }
  0x1d   : > { %s945_s6 = scalar_lea.vmem %s1026_s2, %s603_s30 }
  0x21 PF: > { %v258_v1 = vld [vmem:[%s237_s29] sm:$0xff]  ;;  %v259_v2 = vld [vmem:[%s237_s29 + $0x8] sm:$0xff]  ;;  %v260_v3 = vld [vmem:[%s237_s29 + $0x10] sm:$0xff]  ;;  %v827_v4 = vmov 0.0   ;;  %vm828_vm1 = vmmov 0   ;;  %vm264_vm2 = vcmask 261120   ;;  %v311_v19 = vlaneseq }
  0x22   : > { %625 = vmatprep.subr.bf16.mxu0 %v827_v4  ;;  %v262_v5 = vpack.c.bf16 %v259_v2, %v258_v1  ;;  %v261_v6 = vld [vmem:[%s237_s29 + $0x18] sm:$0xff]  ;;  %629 = vmatprep.mubr.msk.bf16.mxu0 %vm828_vm1, %v827_v4  ;;  %v256_v8 = vld [vmem:[%s232_s13] sm:$0xff]  ;;  %s829_s20 = smov 120   ;;  %vm320_vm3 = vcmask 64512   ;;  %v830_v22 = vmov -1e+30  }
  0x23   : > { %633 = vmatprep.subr.bf16.mxu1 %v827_v4  ;;  %635 = vmatprep.mubr.msk.bf16.mxu1 %vm828_vm1, %v827_v4  ;;  %v263_v7 = vpack.c.bf16 %v261_v6, %v260_v3  ;;  %v257_v9 = vpack.c.bf16 %v256_v8, %v256_v8  ;;  %v312_v20 = vshrl.u32 %v311_v19, 7  ;;  %v314_v21 = vand.u32 127, %v311_v19  ;;  %s831_s25 = smov 112   ;;  %v430_v35 = vld [vmem:[%s945_s6] sm:$0xff]  ;;  %p610_p1 = scmp.ne.s32.totalorder %s809_s18, 3 }
  0x24   : > { %626 = vmatpush3.bf16.msra.mxu0 %v262_v5  ;;  %v431_v36 = vpack.c.bf16 %v430_v35, %v430_v35  ;;  %vm384_vm5 = vcmask 1043456   ;;  %v428_v49 = vld [vmem:[#allocation2] sm:$0xff] }
  0x25   : > { %627 = vmatprep.subr.bf16.mxu0 %v827_v4  ;;  %vm315_vm4 = vcmp.ge.s32.totalorder %v312_v20, %v314_v21 }
  0x26   : > { %v316_v23 = vsel %vm315_vm4, 0.0, %v830_v22  ;;  %v436_v37 = vsel %vm384_vm5, %v431_v36, 0 }
  0x28   : > { %628 = vmatpush3.bf16.msra.mxu0 %v263_v7 }
  0x29   : > { %639 = vmatprep.subr.bf16.mxu0 %v827_v4 }
  0x2b   : > { %630 = vmatmul.mubr.msk.bf16.vlgmr.msra.gmra.mrb[0].mxu0 %vm264_vm2, %v257_v9 }
  0x2c   : > { %641 = vmatprep.mubr.msk.bf16.mxu0 %vm828_vm1, %v827_v4 }
  0xfe   : > { %v302_v10 = vpop.f32.mrb[0].mxu0 }
  0xff   : > { %v631_v11 = vpop.f32.mrb[1].mxu0  ;;  %v310_v12 = vpack.c.bf16 %v302_v10, %v302_v10  ;;  %v308_v17 = vmul.f32 0.35355338, %v302_v10 }
 0x100   : > { %v305_v13 = vpop.f32.mrb[2].mxu0 }
 0x101   : > { %318 = vrot.lane.b32.xlu0 %v310_v12, %s829_s20  ;;  %v632_v14 = vpop.f32.mrb[3].mxu0  ;;  %v309_v18 = vpack.c.bf16 %v308_v17, %v308_v17 }
 0x173   : > { %v319_v15 = vpop.permute.xlu0 %318 }
 0x174   : > { %v325_v16 = vsel %vm320_vm3, %v319_v15, 0 }
 0x175   : > { %634 = vmatpush3.bf16.xpose.msra.mxu1 %v325_v16 }
 0x176   : > { %645 = vmatprep.subr.bf16.mxu1 %v827_v4 }
 0x17c   : > { %636 = vmatmul.mubr.msk.bf16.vlgmr.msra.gmra.mrb[0].mxu1 %vm320_vm3, %v309_v18 }
 0x17d   : > { %647 = vmatprep.mubr.msk.bf16.mxu1 %vm828_vm1, %v827_v4  ;;  %646 = vmatpush3.bf16.msra.mxu1 %v436_v37 }
 0x24f   : > { %v361_v24 = vpop.f32.mrb[0].mxu1 }
 0x250   : > { %v362_v25 = vadd.f32 %v361_v24, %v316_v23  ;;  %v637_v26 = vpop.f32.mrb[1].mxu1 }
 0x251   : > { %v364_v27 = vpop.f32.mrb[2].mxu1 }
 0x252   : > { %v638_v28 = vpop.f32.mrb[3].mxu1  ;;  %v367_v29 = vsel %vm320_vm3, %v362_v25, -inf }
 0x253   : > { %368 = vmax.xlane.f32.xlu0 %v367_v29 }
 0x2e0   : > { %v369_v30 = vpop.xlane.xlu0 %368 }
 0x2e1   : > { %v370_v31 = vsub.f32 %v362_v25, %v369_v30 }
 0x2e3   : > { %v371_v32 = vmul.f32 1.442695, %v370_v31 }
 0x2e5   : > { %727 = vpow2.f32 %v371_v32 }
 0x2ef   : > { %v728_v33 = vpop.eup %727 }
 0x2f0   : > { %v373_v34 = vsel %vm320_vm3, %v728_v33, 0.0 }
 0x2f1   : > { %374 = vadd.xlane.f32.xlu1 %v373_v34 }
 0x302   : > { %379 = vrot.lane.b32.xlu1 %v310_v12, %s831_s25 }
 0x37e   : > { %v375_v38 = vpop.xlane.xlu1 %374 }
 0x37f   : > { %729 = vrcp.f32 %v375_v38 }
 0x382   : > { %v380_v39 = vpop.permute.xlu1 %379 }
 0x383   : > { %v386_v40 = vsel %vm384_vm5, %v380_v39, 0 }
 0x384   : > { %640 = vmatpush3.bf16.msra.mxu0 %v386_v40 }
 0x389   : > { %v730_v41 = vpop.eup %729 }
 0x38a   : > { %v377_v42 = vmul.f32 %v730_v41, %v728_v33 }
 0x38c   : > { %v378_v43 = vpack.c.bf16 %v377_v42, %v377_v42 }
 0x38e   : > { %642 = vmatmul.mubr.msk.bf16.vlgmr.msra.gmra.mrb[4].mxu0 %vm320_vm3, %v378_v43 }
 0x461   : > { %v422_v44 = vpop.f32.mrb[4].mxu0 }
 0x462   : > { %v429_v45 = vpack.c.bf16 %v422_v44, %v422_v44  ;;  %v643_v46 = vpop.f32.mrb[5].mxu0 }
 0x463   : > { %v425_v47 = vpop.f32.mrb[6].mxu0 }
 0x464   : > { %v644_v48 = vpop.f32.mrb[7].mxu0  ;;  %648 = vmatmul.mubr.msk.bf16.vlgmr.msra.gmra.mrb[4].mxu1 %vm320_vm3, %v429_v45 }
 0x534   : > { %483 = sbr.rel (%p610_p1) target bundleno = 1347 (0x543), region = 44 }
 0x537   : > { %v472_v50 = vpop.f32.mrb[4].mxu1 }
 0x538   : > { %v478_v51 = vadd.f32 %v472_v50, %v428_v49  ;;  %v649_v52 = vpop.f32.mrb[5].mxu1 }
 0x539   : > { %v475_v53 = vpop.f32.mrb[6].mxu1 }
 0x53a   : > { %479 = vst.msk [vmem:[#allocation2] sm:$0xff] %vm264_vm2, %v478_v51  ;;  %v650_v54 = vpop.f32.mrb[7].mxu1 }
 0x541   : > { %v484_v55 = vld [vmem:[#allocation2] sm:$0xff] }
 0x542   : > { %485 = vst.msk [vmem:[%s228_s21] sm:$0xff] %vm264_vm2, %v484_v55 }
 0x543 PF: > { %s612_s26 = sshll.u32 %s813_s19, 7  ;;  %s500_s11 = sshll.u32 %s228_s21, 4  ;;  %s501_s11 = int_to_ptr.vmem [resolvable:$true] %s500_s11 }
 0x544   : > { %s973_s10 = scalar_lea.hbm %s1028_s4, %s612_s26  ;;  %s1039_s18 = sand.u32 1, %s801_s16  }
 0x545   : > { %s487_s12 = scalar_lea.sflag [#allocation4], %s1039_s18  ;;  %s731_s13 = scalar_lea.vmem %s501_s11, 128 }
 0x546   : > { %p732_p2 = scmp.ne.s32.totalorder %s501_s11, %s731_s13  ;;  %s832_s14 = smov [#allocation3]  }
 0x547   : > { %s735_s23 = sshll.u32 %s832_s14, 4  ;;  %s736_s23 = int_to_ptr.vmem [resolvable:$false] %s735_s23 }
 0x548   : > { %p733_p4 = pnand %p732_p2, %p907_p3  ;;  %s737_s24 = scalar_lea.vmem %s736_s23, 256 }
 0x549   : > { %p738_p6 = scmp.lt.s32.totalorder %s501_s11, %s736_s23  ;;  %p739_p7 = scmp.lt.s32.totalorder %s737_s24, %s731_s13 }
 0x54a   : > { %p734_p5 = pneg %p733_p4 }
 0x54b   : > { %p740_p8 = por %p739_p7, %p738_p6 }
 0x54d   : > { %p741_p10 = pnand %p740_p8, %p734_p5 }
 0x54f   : > { %744 = shalt.err (!%p741_p10)
}
 0x550   : > { %s745_s19 = scalar_lea.hbm %s973_s10, 128  ;;  %s749_s29 = scalar_lea.hbm %s1028_s4, 256 }
 0x551   : > { %p746_p11 = scmp.ne.s32.totalorder %s973_s10, %s745_s19  ;;  %p750_p0 = scmp.lt.u32.totalorder %s973_s10, %s1028_s4 }
 0x552   : > { %p751_p1 = scmp.lt.u32.totalorder %s749_s29, %s745_s19  ;;  %p753_p4 = scmp.lt.u32.totalorder %s745_s19, %s973_s10 }
 0x553   : > { %p747_p12 = pnand %p746_p11, %p907_p3 }
 0x554   : > { %p752_p2 = por %p751_p1, %p750_p0 }
 0x555   : > { %p748_p13 = pneg %p747_p12 }
 0x556   : > { %p754_p5 = por %p753_p4, %p752_p2 }
 0x558   : > { %p755_p6 = pnand %p754_p5, %p748_p13 }
 0x55a   : > { %758 = shalt.err (!%p755_p6)
}
 0x55b   : > { %651 = dma.vmem_to_hbm [thread:$0]  (%p907_p3), %s501_s11, 128, %s973_s10, %s487_s12  }
 0x55c PF: > { %p657_p7 = scmp.ge.s32.totalorder %s825_s22, 2  ;;  %s512_s20 = sand.u32 1, %s797_s15  }
 0x55d   : > { %s513_s25 = scalar_lea.sflag [#allocation4], %s512_s20 }
 0x55e   : > { %p654_p8 = pnand %p657_p7, %p917_p9 }
 0x560   : > { %792 = dma.done.wait (!%p654_p8), %s513_s25, 128  }
 0x561   : > { %794 = vsyncadd (!%p654_p8), %s513_s25, 4294967168  ;;  %s17_s22 = sadd.s32 1, %s825_s22   ;;  %s1040_s18 = sld [smem:[#allocation6_spill]] }
 0x562   : > { %p14_p10 = scmp.ge.s32.totalorder %s17_s22, 10   ;;  %s1041_s19 = sld [smem:[#allocation7_spill]] }
 0x563   : > { %s1042_s20 = sld [smem:[#allocation8_spill]]  ;;  %s1043_s21 = sld [smem:[#allocation9_spill]] }
 0x564   : > { %s1044_s15 = smov %s801_s16  ;;  %s1045_s16 = smov %s805_s17 }
 0x565   : > { %s1046_s17 = smov %s925_s5  ;;  %16 = sbr.rel (!%p14_p10) target bundleno = 5 (0x5), region = 85 }
 0x56c   :  { %518 = vsyncpa [#allocation4], 1 }
 0x56d   :  { %520 = vsyncpa [#allocation4 + $0x1], 1 }

</bundles_post_ra>
